<compile_context>
chip_gen: v5e
topology: v5e:2x2
jax: 0.10.0
libtpu: 0.0.40
codegen_flags: <defaults>
</compile_context>

<pallas_src>
import jax
import jax.numpy as jnp
import numpy as np
from jax.experimental import pallas as pl
from jax.experimental.pallas import tpu as pltpu

NEG_SLOPE = 0.01  # nn.LeakyReLU default negative_slope
LANE = 128
SUBLANE = 8


def _leaky_relu(v):
    return jnp.where(v >= 0, v, NEG_SLOPE * v)


def hypernet_kernel(x_ref, w1_ref, b1_ref, w2_ref, b2_ref, o_ref):
    # x_ref : (tm, in_dim)      f32
    # w1_ref: (in_dim, Hp)      f32   (pre-transposed, lane-padded)
    # b1_ref: (1, Hp)           f32
    # w2_ref: (Hp, Hp)          f32   (pre-transposed, lane-padded)
    # b2_ref: (1, Hp)           f32
    # o_ref : (tm, Hp)          lane-dense output block
    x = x_ref[...].astype(jnp.float32)          # (tm, in_dim)
    w1 = w1_ref[...]                            # (in_dim, Hp)
    in_dim = x.shape[1]

    # Layer 1: in_dim is tiny (typically 1) -> pure VPU broadcast multiply-accumulate,
    # no MXU round-trip.
    h = b1_ref[...] + x[:, 0:1] * w1[0:1, :]    # (tm, Hp)
    for k in range(1, in_dim):                  # static unroll; in_dim is small
        h = h + x[:, k : k + 1] * w1[k : k + 1, :]
    h = _leaky_relu(h)

    # Layer 2: (tm, Hp) @ (Hp, Hp) on the MXU with f32 accumulation.
    y = jnp.dot(h, w2_ref[...], preferred_element_type=jnp.float32) + b2_ref[...]
    y = _leaky_relu(y)

    o_ref[...] = y.astype(o_ref.dtype)


def hypernetwork_forward(x, w1, b1, w2, b2, *, block_m=256):
    """x: (B, in_dim). w1: (in_dim, h_dim), b1: (h_dim,), w2: (h_dim, h_dim), b2: (h_dim,).

    Weights are stored pre-transposed ((fan_in, fan_out)) so the kernel computes
    y = leaky_relu(leaky_relu(x @ W1 + b1) @ W2 + b2).
    """
    B, in_dim = x.shape
    h_dim = w1.shape[1]

    # Lane-pad the hidden dim to a multiple of 128 (lane-dense output, unmasked stores).
    Hp = max(LANE, pl.cdiv(h_dim, LANE) * LANE)

    # Sublane-pad the batch and pick a batch tile (256 matches the v6e/v7x 2x256 MXU;
    # small batches collapse to a single tile).
    Bp = pl.cdiv(B, SUBLANE) * SUBLANE
    tm = min(block_m, Bp)
    Bp = pl.cdiv(Bp, tm) * tm
    grid = (Bp // tm,)

    f32 = jnp.float32
    xp = jnp.zeros((Bp, in_dim), x.dtype).at[:B, :].set(x)
    w1p = jnp.zeros((in_dim, Hp), f32).at[:, :h_dim].set(w1.astype(f32))
    b1p = jnp.zeros((1, Hp), f32).at[0, :h_dim].set(b1.astype(f32))
    w2p = jnp.zeros((Hp, Hp), f32).at[:h_dim, :h_dim].set(w2.astype(f32))
    b2p = jnp.zeros((1, Hp), f32).at[0, :h_dim].set(b2.astype(f32))
    # Zero-padding keeps padded lanes exactly zero through both layers; padded rows/lanes
    # are sliced off below.

    grid_spec = pltpu.PrefetchScalarGridSpec(
        num_scalar_prefetch=0,
        grid=grid,
        in_specs=[
            pl.BlockSpec((tm, in_dim), lambda i: (i, 0)),   # x: tiled over batch
            pl.BlockSpec((in_dim, Hp), lambda i: (0, 0)),   # W1: VMEM-resident
            pl.BlockSpec((1, Hp), lambda i: (0, 0)),        # b1: VMEM-resident
            pl.BlockSpec((Hp, Hp), lambda i: (0, 0)),       # W2: VMEM-resident
            pl.BlockSpec((1, Hp), lambda i: (0, 0)),        # b2: VMEM-resident
        ],
        out_specs=pl.BlockSpec((tm, Hp), lambda i: (i, 0)),
    )

    out_padded = pl.pallas_call(
        hypernet_kernel,
        out_shape=jax.ShapeDtypeStruct((Bp, Hp), x.dtype),
        grid_spec=grid_spec,
        compiler_params=pltpu.CompilerParams(
            dimension_semantics=("parallel",),  # lets v7x shard batch tiles across both TCs
        ),
    )(xp, w1p, b1p, w2p, b2p)

    return out_padded[:B, :h_dim]


def init_params(key, in_dim, h_dim):
    """Deterministic init mimicking PyTorch nn.Linear default (uniform +/-1/sqrt(fan_in))."""
    k1, k2, k3, k4 = jax.random.split(key, 4)
    bound1 = 1.0 / np.sqrt(in_dim)
    bound2 = 1.0 / np.sqrt(h_dim)
    # Stored pre-transposed: (fan_in, fan_out)
    w1 = jax.random.uniform(k1, (in_dim, h_dim), jnp.float32, -bound1, bound1)
    b1 = jax.random.uniform(k2, (h_dim,), jnp.float32, -bound1, bound1)
    w2 = jax.random.uniform(k3, (h_dim, h_dim), jnp.float32, -bound2, bound2)
    b2 = jax.random.uniform(k4, (h_dim,), jnp.float32, -bound2, bound2)
    return w1, b1, w2, b2


def reference_forward(x, w1, b1, w2, b2):
    h = _leaky_relu(x @ w1 + b1)
    return _leaky_relu(h @ w2 + b2)


if __name__ == "__main__":
    key = jax.random.PRNGKey(0)
    kx, kp = jax.random.split(key)

    in_dim, h_dim, batch = 1, 32, 8
    x = jax.random.normal(kx, (batch, in_dim), dtype=jnp.float32)
    w1, b1, w2, b2 = init_params(kp, in_dim, h_dim)

    out = hypernetwork_forward(x, w1, b1, w2, b2)
    out = jax.block_until_ready(out)

    ref = reference_forward(x, w1, b1, w2, b2)
    np.testing.assert_allclose(np.asarray(out), np.asarray(ref), rtol=1e-5, atol=1e-5)

    print("KERNEL_OK")
</pallas_src>

<mosaic_0001>
module attributes {stable_mosaic.version = 11 : i64} {
  func.func @hypernet_kernel(%arg0: i32, %arg1: memref<8x1xf32, #tpu.memory_space<vmem>>, %arg2: memref<1x128xf32, #tpu.memory_space<vmem>>, %arg3: memref<1x128xf32, #tpu.memory_space<vmem>>, %arg4: memref<128x128xf32, #tpu.memory_space<vmem>>, %arg5: memref<1x128xf32, #tpu.memory_space<vmem>>, %arg6: memref<8x128xf32, #tpu.memory_space<vmem>>) attributes {dimension_semantics = [#tpu.dimension_semantics<parallel>], iteration_bounds = array<i64: 1>, scalar_prefetch = 0 : i64, scratch_operands = 0 : i64, tpu.core_type = #tpu.core_type<tc>, window_params = [{transform_indices = @transform_0, window_bounds = array<i64: 8, 1>}, {pipeline_mode = #tpu.pipeline_mode<synchronous>, transform_indices = @transform_1, window_bounds = array<i64: 1, 128>}, {pipeline_mode = #tpu.pipeline_mode<synchronous>, transform_indices = @transform_2, window_bounds = array<i64: 1, 128>}, {pipeline_mode = #tpu.pipeline_mode<synchronous>, transform_indices = @transform_3, window_bounds = array<i64: 128, 128>}, {pipeline_mode = #tpu.pipeline_mode<synchronous>, transform_indices = @transform_4, window_bounds = array<i64: 1, 128>}, {transform_indices = @transform_5, window_bounds = array<i64: 8, 128>}]} {
    %c0 = arith.constant 0 : index
    %c0_0 = arith.constant 0 : index
    %0 = vector.load %arg1[%c0, %c0_0] : memref<8x1xf32, #tpu.memory_space<vmem>>, vector<8x1xf32>
    %c0_1 = arith.constant 0 : index
    %c0_2 = arith.constant 0 : index
    %1 = vector.load %arg2[%c0_1, %c0_2] : memref<1x128xf32, #tpu.memory_space<vmem>>, vector<1x128xf32>
    %c0_3 = arith.constant 0 : index
    %c0_4 = arith.constant 0 : index
    %2 = vector.load %arg3[%c0_3, %c0_4] : memref<1x128xf32, #tpu.memory_space<vmem>>, vector<1x128xf32>
    %3 = vector.broadcast %0 : vector<8x1xf32> to vector<8x128xf32>
    %4 = vector.broadcast %1 : vector<1x128xf32> to vector<8x128xf32>
    %5 = arith.mulf %3, %4 : vector<8x128xf32>
    %6 = vector.broadcast %2 : vector<1x128xf32> to vector<8x128xf32>
    %7 = arith.addf %6, %5 : vector<8x128xf32>
    %cst = arith.constant 0.000000e+00 : f32
    %8 = vector.broadcast %cst : f32 to vector<8x128xf32>
    %9 = arith.cmpf oge, %7, %8 : vector<8x128xf32>
    %cst_5 = arith.constant 0.00999999977 : f32
    %10 = vector.broadcast %cst_5 : f32 to vector<8x128xf32>
    %11 = arith.mulf %10, %7 : vector<8x128xf32>
    %12 = arith.select %9, %7, %11 : vector<8x128xi1>, vector<8x128xf32>
    %c0_6 = arith.constant 0 : index
    %c0_7 = arith.constant 0 : index
    %13 = vector.load %arg4[%c0_6, %c0_7] : memref<128x128xf32, #tpu.memory_space<vmem>>, vector<128x128xf32>
    %cst_8 = arith.constant dense<0.000000e+00> : vector<8x128xf32>
    %14 = tpu.matmul %12, %13, %cst_8 {dimension_numbers = #tpu.dot_dimension_numbers<[1], [0], [0], [1], [0, 0, 1, 1], [], []>} : vector<8x128xf32>, vector<128x128xf32>, vector<8x128xf32> -> vector<8x128xf32>
    %c0_9 = arith.constant 0 : index
    %c0_10 = arith.constant 0 : index
    %15 = vector.load %arg5[%c0_9, %c0_10] : memref<1x128xf32, #tpu.memory_space<vmem>>, vector<1x128xf32>
    %16 = vector.broadcast %15 : vector<1x128xf32> to vector<8x128xf32>
    %17 = arith.addf %14, %16 : vector<8x128xf32>
    %cst_11 = arith.constant 0.000000e+00 : f32
    %18 = vector.broadcast %cst_11 : f32 to vector<8x128xf32>
    %19 = arith.cmpf oge, %17, %18 : vector<8x128xf32>
    %cst_12 = arith.constant 0.00999999977 : f32
    %20 = vector.broadcast %cst_12 : f32 to vector<8x128xf32>
    %21 = arith.mulf %20, %17 : vector<8x128xf32>
    %22 = arith.select %19, %17, %21 : vector<8x128xi1>, vector<8x128xf32>
    %c0_13 = arith.constant 0 : index
    %c0_14 = arith.constant 0 : index
    %23 = vector.load %arg6[%c0_13, %c0_14] : memref<8x128xf32, #tpu.memory_space<vmem>>, vector<8x128xf32>
    tpu.vector_store %arg6[%c0_13, %c0_14], %22 {strides = array<i32>} : memref<8x128xf32, #tpu.memory_space<vmem>>, vector<8x128xf32>,
    return
  }
  func.func @transform_0(%arg0: i32) -> (i32, i32) {
    %c0_i32 = arith.constant 0 : i32
    %c0_i32_0 = arith.constant 0 : i32
    return %arg0, %c0_i32 : i32, i32
  }
  func.func @transform_1(%arg0: i32) -> (i32, i32) {
    %c0_i32 = arith.constant 0 : i32
    %c0_i32_0 = arith.constant 0 : i32
    %c0_i32_1 = arith.constant 0 : i32
    return %c0_i32, %c0_i32_0 : i32, i32
  }
  func.func @transform_2(%arg0: i32) -> (i32, i32) {
    %c0_i32 = arith.constant 0 : i32
    %c0_i32_0 = arith.constant 0 : i32
    %c0_i32_1 = arith.constant 0 : i32
    return %c0_i32, %c0_i32_0 : i32, i32
  }
  func.func @transform_3(%arg0: i32) -> (i32, i32) {
    %c0_i32 = arith.constant 0 : i32
    %c0_i32_0 = arith.constant 0 : i32
    %c0_i32_1 = arith.constant 0 : i32
    return %c0_i32, %c0_i32_0 : i32, i32
  }
  func.func @transform_4(%arg0: i32) -> (i32, i32) {
    %c0_i32 = arith.constant 0 : i32
    %c0_i32_0 = arith.constant 0 : i32
    %c0_i32_1 = arith.constant 0 : i32
    return %c0_i32, %c0_i32_0 : i32, i32
  }
  func.func @transform_5(%arg0: i32) -> (i32, i32) {
    %c0_i32 = arith.constant 0 : i32
    %c0_i32_0 = arith.constant 0 : i32
    return %arg0, %c0_i32 : i32, i32
  }
}

</mosaic_0001>

<bundles_post_ra>
// kernel: tpu_custom_call.1
= control target key start
LH: loop header
LB: loop body
LE: loop exit
PB: predicated region body
PF: predicated region fallthrough
CT: control target
= control target key end

     0   :  { %10 = vsyncpa [#allocation3], 0  ;;  %s231_s0 = inlined_call_operand.vmem [shape: f32[8,1], index: 0, kind: input, shape index: {}]   ;;  %s232_s1 = inlined_call_operand.vmem [shape: f32[1,128], index: 1, kind: input, shape index: {}]   ;;  %s233_s2 = inlined_call_operand.vmem [shape: f32[1,128], index: 2, kind: input, shape index: {}]   ;;  %s234_s3 = inlined_call_operand.hbm [shape: f32[128,128], index: 3, kind: input, shape index: {}]   ;;  %s235_s4 = inlined_call_operand.vmem [shape: f32[1,128], index: 4, kind: input, shape index: {}]   ;;  %s236_s5 = inlined_call_operand.hbm [shape: f32[8,128], index: 5, kind: output, shape index: {}]  }
   0x1   :  { %11 = vsyncpa [#allocation4], 0  ;;  %s22_s20 = sshll.u32 %s234_s3, 4  ;;  %s178_s21 = smov [#allocation2]   ;;  %s23_s20 = int_to_ptr.hbm [resolvable:$true] %s22_s20 }
   0x2   :  { %s24_s22 = sshll.u32 %s178_s21, 4  ;;  %s179_s23 = smov 128   ;;  %s25_s22 = int_to_ptr.vmem [resolvable:$true] %s24_s22 }
   0x3   :  { %s180_s24 = smov 8  }
   0x4   :  { %30 = dma.hbm_to_vmem [thread:$0]  %s23_s20, 2048, %s25_s22, [#allocation3], %s179_s23, %s179_s23, %s180_s24  }
   0x5   :  { %174 = dma.done.wait [#allocation3], 2048  }
   0x6   :  { %175 = vsyncadd [#allocation3], 4294965248  ;;  %v181_v0 = vmov 0   ;;  %v37_v1 = vld [vmem:[%s231_s0] sm:$0xff]  ;;  %v71_v2 = vld [vmem:[#allocation2 + $0x78] sm:$0xff]  ;;  %s182_s6 = smov [#allocation5]  }
   0x7   :  { %122 = vset.pattern.permute.xlu0 %v181_v0  ;;  %v70_v3 = vld [vmem:[#allocation2 + $0x70] sm:$0xff]  ;;  %76 = vmatpush.msra.mxu0 %v71_v2  ;;  %v69_v4 = vld [vmem:[#allocation2 + $0x68] sm:$0xff]  ;;  %v68_v5 = vld [vmem:[#allocation2 + $0x60] sm:$0xff]  ;;  %s105_s7 = sshll.u32 %s182_s6, 4  ;;  %s107_s9 = sshll.u32 %s236_s5, 4  ;;  %s106_s7 = int_to_ptr.vmem [resolvable:$true] %s105_s7  ;;  %s108_s9 = int_to_ptr.hbm [resolvable:$true] %s107_s9 }
   0x8   :  { %42 = vperm.xlu0 %122, %v37_v1   ;;  %v67_v6 = vld [vmem:[#allocation2 + $0x58] sm:$0xff]  ;;  %v66_v7 = vld [vmem:[#allocation2 + $0x50] sm:$0xff]  ;;  %v65_v8 = vld [vmem:[#allocation2 + $0x48] sm:$0xff] }
   0x9   :  { %77 = vmatpush.msra.mxu0 %v70_v3  ;;  %v64_v9 = vld [vmem:[#allocation2 + $0x40] sm:$0xff]  ;;  %v63_v10 = vld [vmem:[#allocation2 + $0x38] sm:$0xff]  ;;  %v62_v11 = vld [vmem:[#allocation2 + $0x30] sm:$0xff] }
   0xa   :  { %v61_v12 = vld [vmem:[#allocation2 + $0x28] sm:$0xff]  ;;  %v60_v13 = vld [vmem:[#allocation2 + $0x20] sm:$0xff]  ;;  %v59_v14 = vld [vmem:[#allocation2 + $0x18] sm:$0xff] }
   0xb   :  { %78 = vmatpush.msra.mxu0 %v69_v4  ;;  %v58_v15 = vld [vmem:[#allocation2 + $0x10] sm:$0xff]  ;;  %v57_v16 = vld [vmem:[#allocation2 + $0x8] sm:$0xff]  ;;  %v56_v17 = vld [vmem:[#allocation2] sm:$0xff] }
   0xc   :  { %v123_v18 = vld [vmem:[%s232_s1] ss:$0 sm:$0xff] }
   0xd   :  { %79 = vmatpush.msra.mxu0 %v68_v5  ;;  %v124_v19 = vld [vmem:[%s233_s2] ss:$0 sm:$0xff] }
   0xe   :  { %v125_v25 = vld [vmem:[%s235_s4] ss:$0 sm:$0xff] }
   0xf   :  { %80 = vmatpush.msra.mxu0 %v67_v6 }
  0x11   :  { %81 = vmatpush.msra.mxu0 %v66_v7 }
  0x13   :  { %82 = vmatpush.msra.mxu0 %v65_v8 }
  0x15   :  { %83 = vmatpush.msra.mxu0 %v64_v9 }
  0x17   :  { %84 = vmatpush.msra.mxu0 %v63_v10 }
  0x19   :  { %85 = vmatpush.msra.mxu0 %v62_v11 }
  0x1b   :  { %86 = vmatpush.msra.mxu0 %v61_v12 }
  0x1d   :  { %87 = vmatpush.msra.mxu0 %v60_v13 }
  0x1f   :  { %88 = vmatpush.msra.mxu0 %v59_v14 }
  0x21   :  { %89 = vmatpush.msra.mxu0 %v58_v15 }
  0x23   :  { %90 = vmatpush.msra.mxu0 %v57_v16 }
  0x25   :  { %91 = vmatpush.msra.mxu0 %v56_v17 }
  0x7a   :  { %v43_v20 = vpop.permute.xlu0 %42 }
  0x7b   :  { %v48_v21 = vmul.f32 %v123_v18, %v43_v20 }
  0x7d   :  { %v52_v22 = vadd.f32 %v124_v19, %v48_v21 }
  0x7f   :  { %vm53_vm0 = vcmp.ge.f32.partialorder %v52_v22, 0.0  ;;  %v54_v23 = vmul.f32 0.01, %v52_v22 }
  0x81   :  { %v55_v24 = vsel %vm53_vm0, %v52_v22, %v54_v23 }
  0x82   :  { %92 = vmatmul.f32.vlgmr.msra.gmra.mxu0 %v55_v24 }
  0xff   :  { %v93_v26 = vpop.f32.mrf.mxu0 }
 0x100   :  { %v94_v27 = vadd.f32 %v125_v25, %v93_v26 }
 0x102   :  { %vm96_vm1 = vcmp.ge.f32.partialorder %v94_v27, 0.0  ;;  %v97_v28 = vmul.f32 0.01, %v94_v27 }
 0x104   :  { %v98_v29 = vsel %vm96_vm1, %v94_v27, %v97_v28 }
 0x105   :  { %99 = vst [vmem:[#allocation5] sm:$0xff] %v98_v29 }
 0x106   :  { %110 = dma.vmem_to_hbm [thread:$0]  %s106_s7, 128, %s108_s9, [#allocation4]  }
 0x107   :  { %176 = dma.done.wait [#allocation4], 128  }
 0x108   :  { %177 = vsyncadd [#allocation4], 4294967168 }
 0x109   :  { %115 = vsyncpa [#allocation3], 1 }
 0x10a   :  { %116 = vsyncpa [#allocation4], 1 }

</bundles_post_ra>
